<compile_context>
chip_gen: v7x
topology: tpu7x:2x2x1
jax: 0.10.0
libtpu: 0.0.40
codegen_flags: <defaults>
</compile_context>

<pallas_src>
import functools

import jax
import jax.numpy as jnp
from jax.experimental import pallas as pl
from jax.experimental.pallas import tpu as pltpu

# Static feature-index sets from the PyTorch forward.
Y_IDX = list(range(19)) + [21, 24]          # 21 "pass-through" features
T_IDX = [19, 22, 25]                        # time features (TRAIN, SM, CAR)
C_IDX = [20, 23, 26]                        # cost features (TRAIN, SM, CAR)

F_MIN = 27                                  # must cover index 26


def mnl_kernel(x_ref, m_ref, b_ref, out_ref):
    """out = x @ M + b_eff for one batch tile.

    x_ref   : VMEM (TILE_B, F)  -> raw input features (lane-dense block)
    m_ref   : VMEM (F, 3)       -> folded weight matrix (resident)
    b_ref   : VMEM (1, 3)       -> folded bias (resident)
    out_ref : VMEM (TILE_B, 3)
    """
    out_ref[...] = (
        jnp.dot(x_ref[...], m_ref[...], preferred_element_type=jnp.float32)
        + b_ref[...]
    )


def _fold_params(params, num_features):
    """Fold ASC/B_TIME/B_COST and the gather pattern into (M, b_eff)."""
    w = params["linear_w"].astype(jnp.float32)        # (3, 24)
    wy = w[:, :21]                                    # (3, 21) -> y rows
    wv = w[:, 21:]                                    # (3, 3)  -> V1..V3 rows

    b_time = params["B_TIME"].astype(jnp.float32)[0]
    b_cost = params["B_COST"].astype(jnp.float32)[0]
    asc = jnp.concatenate([params["ASC_TRAIN"], params["ASC_SM"],
                           params["ASC_CAR"]]).astype(jnp.float32)   # (3,)

    m = jnp.zeros((num_features, 3), jnp.float32)
    m = m.at[jnp.array(Y_IDX), :].set(wy.T)           # pass-through features
    m = m.at[jnp.array(T_IDX), :].set(b_time * wv.T)  # time features
    m = m.at[jnp.array(C_IDX), :].set(b_cost * wv.T)  # cost features

    b_eff = (params["linear_b"].astype(jnp.float32) + asc @ wv.T).reshape(1, 3)
    return m, b_eff


def _pick_tile_b(batch):
    """Batch tile: multiple of 8 sublanes, large enough to amortize the
    ~0.35us/grid-step overhead, small enough that double-buffered blocks fit
    v5e's 16 MiB scoped VMEM (and v7x's 32 MiB default) with margin."""
    padded = ((batch + 7) // 8) * 8
    return min(2048, padded)


@functools.partial(jax.jit, static_argnames=())
def mnl_forward(x, params):
    """x: (B, F) with F >= 27.  Returns (B, 3) float32."""
    x = x.astype(jnp.float32)
    B, F = x.shape
    assert F >= F_MIN, "input must have at least 27 features"

    m, b_eff = _fold_params(params, F)                # tiny (F,3)/(1,3) glue

    tile_b = _pick_tile_b(B)
    grid = (pl.cdiv(B, tile_b),)

    out = pl.pallas_call(
        mnl_kernel,
        out_shape=jax.ShapeDtypeStruct((B, 3), jnp.float32),
        grid_spec=pltpu.PrefetchScalarGridSpec(
            num_scalar_prefetch=0,
            grid=grid,
            in_specs=[
                pl.BlockSpec((tile_b, F), lambda i: (i, 0)),  # streamed x
                pl.BlockSpec((F, 3), lambda i: (0, 0)),       # resident M
                pl.BlockSpec((1, 3), lambda i: (0, 0)),       # resident bias
            ],
            out_specs=pl.BlockSpec((tile_b, 3), lambda i: (i, 0)),
        ),
        compiler_params=pltpu.CompilerParams(
            dimension_semantics=("parallel",),                # megacore on v7x
        ),
    )(x, m, b_eff)
    return out


def mnl_reference(x, params):
    """Pure-JAX reference mirroring the PyTorch forward exactly."""
    x = x.astype(jnp.float32)
    v1 = params["ASC_TRAIN"] + params["B_TIME"] * x[:, 19] + params["B_COST"] * x[:, 20]
    v2 = params["ASC_SM"] + params["B_TIME"] * x[:, 22] + params["B_COST"] * x[:, 23]
    v3 = params["ASC_CAR"] + params["B_TIME"] * x[:, 25] + params["B_COST"] * x[:, 26]
    y = x[:, jnp.array(Y_IDX)]
    V = jnp.concatenate([y, v1[:, None], v2[:, None], v3[:, None]], axis=1)
    return V @ params["linear_w"].T + params["linear_b"]


def init_params(key):
    """Deterministic synthetic parameters with the same shapes as __init__."""
    ks = jax.random.split(key, 7)
    bound = 1.0 / jnp.sqrt(24.0)   # torch.nn.Linear default init bound
    return {
        "ASC_TRAIN": jax.random.normal(ks[0], (1,), jnp.float32),
        "ASC_SM":    jax.random.normal(ks[1], (1,), jnp.float32),
        "ASC_CAR":   jax.random.normal(ks[2], (1,), jnp.float32),
        "B_TIME":    jax.random.normal(ks[3], (1,), jnp.float32),
        "B_COST":    jax.random.normal(ks[4], (1,), jnp.float32),
        "linear_w":  jax.random.uniform(ks[5], (3, 24), jnp.float32, -bound, bound),
        "linear_b":  jax.random.uniform(ks[6], (3,), jnp.float32, -bound, bound),
    }


if __name__ == "__main__":
    key = jax.random.PRNGKey(0)
    k_param, k_x = jax.random.split(key)

    params = init_params(k_param)

    # Small batch; feature dim must cover index 26 -> use 27 features.
    x = jax.random.normal(k_x, (8, 27), jnp.float32)
    out = jax.block_until_ready(mnl_forward(x, params))
    ref = mnl_reference(x, params)
    assert out.shape == (8, 3)
    assert jnp.allclose(out, ref, atol=1e-5, rtol=1e-5), (out, ref)

    # A second, larger / non-divisible batch exercises the tiled grid path
    # (multiple grid steps + a partial final block).
    x_big = jax.random.normal(jax.random.PRNGKey(1), (4100, 27), jnp.float32)
    out_big = jax.block_until_ready(mnl_forward(x_big, params))
    ref_big = mnl_reference(x_big, params)
    assert out_big.shape == (4100, 3)
    assert jnp.allclose(out_big, ref_big, atol=1e-4, rtol=1e-5)

    print("KERNEL_OK")
</pallas_src>

<mosaic_0001>
module attributes {stable_mosaic.version = 11 : i64} {
  func.func @mnl_kernel(%arg0: i32, %arg1: memref<8x27xf32, #tpu.memory_space<vmem>>, %arg2: memref<27x3xf32, #tpu.memory_space<vmem>>, %arg3: memref<1x3xf32, #tpu.memory_space<vmem>>, %arg4: memref<8x3xf32, #tpu.memory_space<vmem>>) attributes {dimension_semantics = [#tpu.dimension_semantics<parallel>], iteration_bounds = array<i64: 1>, scalar_prefetch = 0 : i64, scratch_operands = 0 : i64, tpu.core_type = #tpu.core_type<tc>, window_params = [{transform_indices = @transform_0, window_bounds = array<i64: 8, 27>}, {pipeline_mode = #tpu.pipeline_mode<synchronous>, transform_indices = @transform_1, window_bounds = array<i64: 27, 3>}, {pipeline_mode = #tpu.pipeline_mode<synchronous>, transform_indices = @transform_2, window_bounds = array<i64: 1, 3>}, {transform_indices = @transform_3, window_bounds = array<i64: 8, 3>}]} {
    %c0 = arith.constant 0 : index
    %c0_0 = arith.constant 0 : index
    %0 = vector.load %arg1[%c0, %c0_0] : memref<8x27xf32, #tpu.memory_space<vmem>>, vector<8x27xf32>
    %c0_1 = arith.constant 0 : index
    %c0_2 = arith.constant 0 : index
    %1 = vector.load %arg2[%c0_1, %c0_2] : memref<27x3xf32, #tpu.memory_space<vmem>>, vector<27x3xf32>
    %cst = arith.constant dense<0.000000e+00> : vector<8x3xf32>
    %2 = tpu.matmul %0, %1, %cst {dimension_numbers = #tpu.dot_dimension_numbers<[1], [0], [0], [1], [0, 0, 1, 1], [], []>} : vector<8x27xf32>, vector<27x3xf32>, vector<8x3xf32> -> vector<8x3xf32>
    %c0_3 = arith.constant 0 : index
    %c0_4 = arith.constant 0 : index
    %3 = vector.load %arg3[%c0_3, %c0_4] : memref<1x3xf32, #tpu.memory_space<vmem>>, vector<1x3xf32>
    %4 = vector.broadcast %3 : vector<1x3xf32> to vector<8x3xf32>
    %5 = arith.addf %2, %4 : vector<8x3xf32>
    %c0_5 = arith.constant 0 : index
    %c0_6 = arith.constant 0 : index
    %6 = vector.load %arg4[%c0_5, %c0_6] : memref<8x3xf32, #tpu.memory_space<vmem>>, vector<8x3xf32>
    tpu.vector_store %arg4[%c0_5, %c0_6], %5 {strides = array<i32>} : memref<8x3xf32, #tpu.memory_space<vmem>>, vector<8x3xf32>,
    return
  }
  func.func @transform_0(%arg0: i32) -> (i32, i32) {
    %c0_i32 = arith.constant 0 : i32
    %c0_i32_0 = arith.constant 0 : i32
    return %arg0, %c0_i32 : i32, i32
  }
  func.func @transform_1(%arg0: i32) -> (i32, i32) {
    %c0_i32 = arith.constant 0 : i32
    %c0_i32_0 = arith.constant 0 : i32
    %c0_i32_1 = arith.constant 0 : i32
    return %c0_i32, %c0_i32_0 : i32, i32
  }
  func.func @transform_2(%arg0: i32) -> (i32, i32) {
    %c0_i32 = arith.constant 0 : i32
    %c0_i32_0 = arith.constant 0 : i32
    %c0_i32_1 = arith.constant 0 : i32
    return %c0_i32, %c0_i32_0 : i32, i32
  }
  func.func @transform_3(%arg0: i32) -> (i32, i32) {
    %c0_i32 = arith.constant 0 : i32
    %c0_i32_0 = arith.constant 0 : i32
    return %arg0, %c0_i32 : i32, i32
  }
}

</mosaic_0001>

<bundles_post_ra>
// kernel: mnl_forward.1
= control target key start
LH: loop header
LB: loop body
LE: loop exit
PB: predicated region body
PF: predicated region fallthrough
CT: control target
= control target key end

     0   :  { %v140_v0 = vmov 0.0|0.0   ;;  %vm30_vm0 = vcmask 1042432   ;;  %vm141_vm1 = vmmov 0   ;;  %v142_v6 = vmov 0.0   ;;  %s185_s1 = inlined_call_operand.vmem [shape: f32[27,3], index: 1, kind: input, shape index: {}]   ;;  %s186_s0 = inlined_call_operand.vmem [shape: f32[8,27], index: 0, kind: input, shape index: {}]   ;;  %s187_s2 = inlined_call_operand.vmem [shape: f32[1,3], index: 2, kind: input, shape index: {}]   ;;  %s188_s3 = inlined_call_operand.vmem [shape: f32[8,3], index: 3, kind: output, shape index: {}]  }
   0x1   :  { %129 = vmatprep.subr.bf16.mxu0 %v140_v0  ;;  %v15_v1 = vld [vmem:[%s185_s1] sm:$0xff]  ;;  %v16_v2 = vld [vmem:[%s185_s1 + $0x8] sm:$0xff]  ;;  %v17_v3 = vld [vmem:[%s185_s1 + $0x10] sm:$0xff]  ;;  %126 = vmatprep.mubr.msk.f32.mxu0 %vm141_vm1, %v142_v6  ;;  %vm143_vm2 = vmmov 1   ;;  %vm26_vm4 = vcmask 220160   ;;  %vm104_vm5 = vcmask 23552  }
   0x2   :  { %v130_v4 = vpack.c.bf16 %v16_v2, %v15_v1  ;;  %v18_v5 = vld [vmem:[%s185_s1 + $0x18] sm:$0x7]  ;;  %vm134_vm3 = vmpackc.low %vm30_vm0, %vm143_vm2  ;;  %v14_v8 = vld [vmem:[%s186_s0] sm:$0xff] }
   0x3   :  { %v133_v7 = vpack.c.bf16 %v18_v5, %v17_v3  ;;  %v110_v9 = vld [vmem:[%s187_s2] ss:$0 sm:$0xff] }
   0x4   :  { %131 = vmatpush3.bf16.msra.mxu0 %v130_v4 }
   0x5   :  { %132 = vmatprep.subr.bf16.mxu0 %v140_v0 }
   0x8   :  { %135 = vmatpush3.bf16.msk.msra.mxu0 %vm134_vm3, %v133_v7 }
   0xb   :  { %127 = vmatmul.mubr.msk.f32.vlgmr.msra.gmra.mrb[0].mxu0 %vm26_vm4, %v14_v8 }
  0xde   :  { %v100_v10 = vpop.f32.mrb[0].mxu0 }
  0xdf   :  { %v101_v11 = vadd.f32 %v110_v9, %v100_v10  ;;  %v128_v12 = vpop.f32.mrb[1].mxu0 }
  0xe1   :  { %105 = vst.msk [vmem:[%s188_s3] sm:$0xff] %vm104_vm5, %v101_v11 }

</bundles_post_ra>
